<compile_context>
chip_gen: v7x
topology: tpu7x:2x2x1
jax: 0.10.0
libtpu: 0.0.40
codegen_flags: <defaults>
</compile_context>

<pallas_src>
import functools

import jax
import jax.numpy as jnp
from jax import lax
from jax.experimental import pallas as pl
from jax.experimental.pallas import tpu as pltpu
import numpy as np


# Dominant weight stream dtype.  bf16 halves HBM->VMEM bytes and uses the
# full-rate bf16 MXU path; set to jnp.float32 for bit-tight reference checks.
WFC_DTYPE = jnp.bfloat16


# ----------------------------------------------------------------------------
# Fused kernel: LSTM recurrence (step 0) + per-F1-tile rnn_fc + final layer
# ----------------------------------------------------------------------------
def _rnn_decoder_kernel(x_ref, enc_ref, wih_ref, whh_ref, b_ref,
                        wfc_ref, bfc_ref, wf1_ref, wf2_ref, bf_ref,
                        out_ref, hid_ref, *, T, B, H):
    j = pl.program_id(0)

    # ---- grid step 0: serial LSTM recurrence + b-major flatten into scratch -
    @pl.when(j == 0)
    def _():
        # Hoisted input projection for all timesteps (one MXU dot, K=I) with
        # the combined (b_ih + b_hh) bias; gate columns already permuted to
        # [i | f | o | g] by the wrapper.
        xg = (jnp.dot(x_ref[...], wih_ref[...],
                      preferred_element_type=jnp.float32)
              + b_ref[...])                                      # (T*B, 4H)
        whh = whh_ref[...]                                       # (H, 4H)

        h = jnp.zeros((B, H), jnp.float32)
        c = jnp.zeros((B, H), jnp.float32)
        for t in range(T):          # small static unroll (T known at trace)
            gates = xg[t * B:(t + 1) * B, :] + jnp.dot(
                h, whh, preferred_element_type=jnp.float32)      # (B, 4H)
            sig = jax.nn.sigmoid(gates[:, :3 * H])   # i|f|o in one EUP pass
            i_g = sig[:, 0 * H:1 * H]
            f_g = sig[:, 1 * H:2 * H]
            o_g = sig[:, 2 * H:3 * H]
            g_g = jnp.tanh(gates[:, 3 * H:4 * H])
            c = f_g * c + i_g * g_g
            h = o_g * jnp.tanh(c)
            # hidden.view(N, -1) row for this timestep: b-major lane layout,
            # built from static sublane slices + a lane concat (no reshape).
            row = jnp.concatenate([h[b:b + 1, :] for b in range(B)], axis=1)
            hid_ref[pl.ds(t, 1), :] = row                        # (1, B*H)

        # Initialize the output accumulator with the final-layer bias.
        out_ref[...] = jnp.broadcast_to(bf_ref[...], out_ref.shape)

    # ---- every grid step: one F1 tile of rnn_fc + final-layer accumulation --
    hid = hid_ref[...].astype(wfc_ref.dtype)           # (T, B*H) matmul LHS
    hfc = (jnp.dot(hid, wfc_ref[...],
                   preferred_element_type=jnp.float32)
           + bfc_ref[...])                              # (T, TILE_F)
    dn = (((1,), (1,)), ((), ()))                       # contract F1 tile axis
    out_ref[...] += (
        lax.dot_general(enc_ref[...], wf1_ref[...], dn,
                        preferred_element_type=jnp.float32)
        + lax.dot_general(hfc, wf2_ref[...], dn,
                          preferred_element_type=jnp.float32))


def rnn_decoder_forward(params, enc_out, dec_inp, *, tile_f=256):
    """dec_inp: (N, num_features, max_len); enc_out: (N, 1000)."""
    T, B, I = dec_inp.shape                   # T = N (LSTM seq axis)
    H = params["w_hh"].shape[1]
    F1 = enc_out.shape[1]                     # 1000
    class_n = params["w_final"].shape[0]
    F1P = pl.cdiv(F1, tile_f) * tile_f        # 1000 -> 1024
    n_tiles = F1P // tile_f

    # --- Cheap XLA-side layout prep (weights / inputs only; once per call) ---
    def permute_gates(w):                     # columns [i|f|g|o] -> [i|f|o|g]
        i, f, g, o = jnp.split(w, 4, axis=-1)
        return jnp.concatenate([i, f, o, g], axis=-1)

    pad_f = lambda a: jnp.pad(a, ((0, 0), (0, F1P - F1)))

    x_all = dec_inp.reshape(T * B, I).astype(jnp.float32)        # (T*B, I)
    wih_t = permute_gates(params["w_ih"].T)                      # (I, 4H)
    whh_t = permute_gates(params["w_hh"].T)                      # (H, 4H)
    bias = permute_gates(
        (params["b_ih"] + params["b_hh"]).reshape(1, 4 * H))     # (1, 4H)
    wfc_t = pad_f(params["w_fc"].T).astype(WFC_DTYPE)            # (B*H, F1P)
    bfc = pad_f(params["b_fc"].reshape(1, F1))                   # (1, F1P)
    enc_p = pad_f(enc_out.astype(jnp.float32))                   # (T, F1P)
    wf1 = pad_f(params["w_final"][:, :F1])                       # (class_n, F1P)
    wf2 = pad_f(params["w_final"][:, F1:])                       # (class_n, F1P)
    bf = params["b_final"].reshape(1, class_n)                   # (1, class_n)

    const = lambda s: pl.BlockSpec(s, lambda j: (0,) * len(s))
    ftile = lambda rows: pl.BlockSpec((rows, tile_f), lambda j: (0, j))

    kernel = functools.partial(_rnn_decoder_kernel, T=T, B=B, H=H)
    return pl.pallas_call(
        kernel,
        out_shape=jax.ShapeDtypeStruct((T, class_n), jnp.float32),
        grid=(n_tiles,),
        in_specs=[
            const((T * B, I)),        # x_all          (recurrence, step 0)
            ftile(T),                 # enc_out padded (streamed per F1 tile)
            const((I, 4 * H)),        # w_ih^T
            const((H, 4 * H)),        # w_hh^T
            const((1, 4 * H)),        # b_ih + b_hh
            ftile(B * H),             # w_fc^T  (bf16, dominant stream)
            ftile(1),                 # b_fc
            ftile(class_n),           # w_final[:, :1000]
            ftile(class_n),           # w_final[:, 1000:]
            const((1, class_n)),      # b_final
        ],
        out_specs=const((T, class_n)),                       # accumulator
        scratch_shapes=[pltpu.VMEM((T, B * H), jnp.float32)],  # flat hidden
        compiler_params=pltpu.CompilerParams(
            dimension_semantics=("arbitrary",)),
    )(x_all, enc_p, wih_t, whh_t, bias, wfc_t, bfc, wf1, wf2, bf)


# ----------------------------------------------------------------------------
# Pure-JAX reference (PyTorch semantics)
# ----------------------------------------------------------------------------
def rnn_decoder_ref(params, enc_out, dec_inp):
    w_ih, w_hh = params["w_ih"], params["w_hh"]
    b_ih, b_hh = params["b_ih"], params["b_hh"]
    T, B, _ = dec_inp.shape
    H = w_hh.shape[1]

    def step(carry, x_t):
        h, c = carry
        gates = x_t @ w_ih.T + b_ih + h @ w_hh.T + b_hh
        i, f, g, o = jnp.split(gates, 4, axis=1)
        c = jax.nn.sigmoid(f) * c + jax.nn.sigmoid(i) * jnp.tanh(g)
        h = jax.nn.sigmoid(o) * jnp.tanh(c)
        return (h, c), h

    init = (jnp.zeros((B, H), jnp.float32), jnp.zeros((B, H), jnp.float32))
    _, hs = lax.scan(step, init, dec_inp)                           # (T, B, H)
    hidden = hs.reshape(T, -1) @ params["w_fc"].T + params["b_fc"]
    concat = jnp.concatenate([enc_out, hidden], axis=1)
    return concat @ params["w_final"].T + params["b_final"]


# ----------------------------------------------------------------------------
# Deterministic parameter init (PyTorch-style uniform(-k, k))
# ----------------------------------------------------------------------------
def init_params(key, max_len, embedding_dim, num_features, class_n):
    H = embedding_dim
    ks = jax.random.split(key, 8)
    k_lstm = 1.0 / np.sqrt(H)
    k_fc = 1.0 / np.sqrt(num_features * H)
    k_final = 1.0 / np.sqrt(2000)
    u = lambda k, shape, b: jax.random.uniform(k, shape, jnp.float32, -b, b)
    return {
        "w_ih": u(ks[0], (4 * H, max_len), k_lstm),
        "w_hh": u(ks[1], (4 * H, H), k_lstm),
        "b_ih": u(ks[2], (4 * H,), k_lstm),
        "b_hh": u(ks[3], (4 * H,), k_lstm),
        "w_fc": u(ks[4], (1000, num_features * H), k_fc),
        "b_fc": u(ks[5], (1000,), k_fc),
        "w_final": u(ks[6], (class_n, 2000), k_final),
        "b_final": u(ks[7], (class_n,), k_final),
    }


if __name__ == "__main__":
    # Small, shape-consistent config.
    max_len = 16          # LSTM input size
    embedding_dim = 32    # LSTM hidden size
    num_features = 8      # LSTM "batch" axis
    class_n = 10
    N = 4                 # real batch (LSTM seq axis)

    key = jax.random.PRNGKey(0)
    kp, ke, kd = jax.random.split(key, 3)
    params = init_params(kp, max_len, embedding_dim, num_features, class_n)

    enc_out = jax.random.normal(ke, (N, 1000), jnp.float32)
    dec_inp = jax.random.normal(kd, (N, num_features, max_len), jnp.float32)

    out = jax.jit(functools.partial(rnn_decoder_forward, params))(enc_out,
                                                                  dec_inp)
    out = jax.block_until_ready(out)

    ref = jax.block_until_ready(rnn_decoder_ref(params, enc_out, dec_inp))
    assert out.shape == (N, class_n), out.shape
    # bf16 w_fc stream -> slightly looser tolerance; with WFC_DTYPE=float32 the
    # kernel matches the f32 reference at 5e-4.
    tol = 5e-4 if WFC_DTYPE == jnp.float32 else 1e-2
    np.testing.assert_allclose(np.asarray(out), np.asarray(ref),
                               rtol=tol, atol=tol)
    print("KERNEL_OK")
</pallas_src>

<mosaic_0001>
module attributes {stable_mosaic.version = 11 : i64} {
  func.func @_rnn_decoder_kernel(%arg0: i32, %arg1: memref<32x16xf32, #tpu.memory_space<vmem>>, %arg2: memref<4x256xf32, #tpu.memory_space<vmem>>, %arg3: memref<16x128xf32, #tpu.memory_space<vmem>>, %arg4: memref<32x128xf32, #tpu.memory_space<vmem>>, %arg5: memref<1x128xf32, #tpu.memory_space<vmem>>, %arg6: memref<256x256xbf16, #tpu.memory_space<vmem>>, %arg7: memref<1x256xf32, #tpu.memory_space<vmem>>, %arg8: memref<10x256xf32, #tpu.memory_space<vmem>>, %arg9: memref<10x256xf32, #tpu.memory_space<vmem>>, %arg10: memref<1x10xf32, #tpu.memory_space<vmem>>, %arg11: memref<4x10xf32, #tpu.memory_space<vmem>>, %arg12: memref<4x256xf32, #tpu.memory_space<vmem>>) attributes {dimension_semantics = [#tpu.dimension_semantics<arbitrary>], iteration_bounds = array<i64: 4>, scalar_prefetch = 0 : i64, scratch_operands = 1 : i64, tpu.core_type = #tpu.core_type<tc>, window_params = [{pipeline_mode = #tpu.pipeline_mode<synchronous>, transform_indices = @transform_0, window_bounds = array<i64: 32, 16>}, {transform_indices = @transform_1, window_bounds = array<i64: 4, 256>}, {pipeline_mode = #tpu.pipeline_mode<synchronous>, transform_indices = @transform_2, window_bounds = array<i64: 16, 128>}, {pipeline_mode = #tpu.pipeline_mode<synchronous>, transform_indices = @transform_3, window_bounds = array<i64: 32, 128>}, {pipeline_mode = #tpu.pipeline_mode<synchronous>, transform_indices = @transform_4, window_bounds = array<i64: 1, 128>}, {transform_indices = @transform_5, window_bounds = array<i64: 256, 256>}, {transform_indices = @transform_6, window_bounds = array<i64: 1, 256>}, {transform_indices = @transform_7, window_bounds = array<i64: 10, 256>}, {transform_indices = @transform_8, window_bounds = array<i64: 10, 256>}, {pipeline_mode = #tpu.pipeline_mode<synchronous>, transform_indices = @transform_9, window_bounds = array<i64: 1, 10>}, {pipeline_mode = #tpu.pipeline_mode<synchronous>, transform_indices = @transform_10, window_bounds = array<i64: 4, 10>}]} {
    %c0_i32 = arith.constant 0 : i32
    %0 = arith.cmpi eq, %arg0, %c0_i32 : i32
    %1 = arith.extui %0 : i1 to i32
    %c0_i32_0 = arith.constant 0 : i32
    %2 = arith.cmpi ne, %1, %c0_i32_0 : i32
    scf.if %2 {
      %c0_18 = arith.constant 0 : index
      %c0_19 = arith.constant 0 : index
      %19 = vector.load %arg1[%c0_18, %c0_19] : memref<32x16xf32, #tpu.memory_space<vmem>>, vector<32x16xf32>
      %c0_20 = arith.constant 0 : index
      %c0_21 = arith.constant 0 : index
      %20 = vector.load %arg3[%c0_20, %c0_21] : memref<16x128xf32, #tpu.memory_space<vmem>>, vector<16x128xf32>
      %cst_22 = arith.constant dense<0.000000e+00> : vector<32x128xf32>
      %21 = tpu.matmul %19, %20, %cst_22 {dimension_numbers = #tpu.dot_dimension_numbers<[1], [0], [0], [1], [0, 0, 1, 1], [], []>} : vector<32x16xf32>, vector<16x128xf32>, vector<32x128xf32> -> vector<32x128xf32>
      %c0_23 = arith.constant 0 : index
      %c0_24 = arith.constant 0 : index
      %22 = vector.load %arg5[%c0_23, %c0_24] : memref<1x128xf32, #tpu.memory_space<vmem>>, vector<1x128xf32>
      %23 = vector.broadcast %22 : vector<1x128xf32> to vector<32x128xf32>
      %24 = arith.addf %21, %23 : vector<32x128xf32>
      %c0_25 = arith.constant 0 : index
      %c0_26 = arith.constant 0 : index
      %25 = vector.load %arg4[%c0_25, %c0_26] : memref<32x128xf32, #tpu.memory_space<vmem>>, vector<32x128xf32>
      %cst_27 = arith.constant 0.000000e+00 : f32
      %26 = vector.broadcast %cst_27 : f32 to vector<8x32xf32>
      %cst_28 = arith.constant 0.000000e+00 : f32
      %27 = vector.broadcast %cst_28 : f32 to vector<8x32xf32>
      %28 = vector.extract_strided_slice %24 {offsets = [0, 0], sizes = [8, 128], strides = [1, 1]} : vector<32x128xf32> to vector<8x128xf32>
      %cst_29 = arith.constant dense<0.000000e+00> : vector<8x128xf32>
      %29 = tpu.matmul %26, %25, %cst_29 {dimension_numbers = #tpu.dot_dimension_numbers<[1], [0], [0], [1], [0, 0, 1, 1], [], []>} : vector<8x32xf32>, vector<32x128xf32>, vector<8x128xf32> -> vector<8x128xf32>
      %30 = arith.addf %28, %29 : vector<8x128xf32>
      %31 = vector.extract_strided_slice %30 {offsets = [0, 0], sizes = [8, 96], strides = [1, 1]} : vector<8x128xf32> to vector<8x96xf32>
      %32 = arith.negf %31 : vector<8x96xf32>
      %33 = math.exp %32 : vector<8x96xf32>
      %cst_30 = arith.constant 1.000000e+00 : f32
      %34 = vector.broadcast %cst_30 : f32 to vector<8x96xf32>
      %35 = arith.addf %34, %33 : vector<8x96xf32>
      %36 = arith.divf %34, %35 : vector<8x96xf32>
      %37 = vector.extract_strided_slice %36 {offsets = [0, 0], sizes = [8, 32], strides = [1, 1]} : vector<8x96xf32> to vector<8x32xf32>
      %38 = vector.extract_strided_slice %36 {offsets = [0, 32], sizes = [8, 32], strides = [1, 1]} : vector<8x96xf32> to vector<8x32xf32>
      %39 = vector.extract_strided_slice %36 {offsets = [0, 64], sizes = [8, 32], strides = [1, 1]} : vector<8x96xf32> to vector<8x32xf32>
      %40 = vector.extract_strided_slice %30 {offsets = [0, 96], sizes = [8, 32], strides = [1, 1]} : vector<8x128xf32> to vector<8x32xf32>
      %41 = math.tanh %40 : vector<8x32xf32>
      %42 = arith.mulf %38, %27 : vector<8x32xf32>
      %43 = arith.mulf %37, %41 : vector<8x32xf32>
      %44 = arith.addf %42, %43 : vector<8x32xf32>
      %45 = math.tanh %44 : vector<8x32xf32>
      %46 = arith.mulf %39, %45 : vector<8x32xf32>
      %47 = vector.extract_strided_slice %46 {offsets = [0, 0], sizes = [1, 32], strides = [1, 1]} : vector<8x32xf32> to vector<1x32xf32>
      %48 = vector.extract_strided_slice %46 {offsets = [1, 0], sizes = [1, 32], strides = [1, 1]} : vector<8x32xf32> to vector<1x32xf32>
      %49 = vector.extract_strided_slice %46 {offsets = [2, 0], sizes = [1, 32], strides = [1, 1]} : vector<8x32xf32> to vector<1x32xf32>
      %50 = vector.extract_strided_slice %46 {offsets = [3, 0], sizes = [1, 32], strides = [1, 1]} : vector<8x32xf32> to vector<1x32xf32>
      %51 = vector.extract_strided_slice %46 {offsets = [4, 0], sizes = [1, 32], strides = [1, 1]} : vector<8x32xf32> to vector<1x32xf32>
      %52 = vector.extract_strided_slice %46 {offsets = [5, 0], sizes = [1, 32], strides = [1, 1]} : vector<8x32xf32> to vector<1x32xf32>
      %53 = vector.extract_strided_slice %46 {offsets = [6, 0], sizes = [1, 32], strides = [1, 1]} : vector<8x32xf32> to vector<1x32xf32>
      %54 = vector.extract_strided_slice %46 {offsets = [7, 0], sizes = [1, 32], strides = [1, 1]} : vector<8x32xf32> to vector<1x32xf32>
      %55 = tpu.concatenate %47, %48, %49, %50, %51, %52, %53, %54 in 1 : vector<1x32xf32>, vector<1x32xf32>, vector<1x32xf32>, vector<1x32xf32>, vector<1x32xf32>, vector<1x32xf32>, vector<1x32xf32>, vector<1x32xf32> -> vector<1x256xf32>
      %c0_31 = arith.constant 0 : index
      %c0_32 = arith.constant 0 : index
      %56 = vector.load %arg12[%c0_31, %c0_32] : memref<4x256xf32, #tpu.memory_space<vmem>>, vector<1x256xf32>
      tpu.vector_store %arg12[%c0_31, %c0_32], %55 {strides = array<i32>} : memref<4x256xf32, #tpu.memory_space<vmem>>, vector<1x256xf32>,
      %57 = vector.extract_strided_slice %24 {offsets = [8, 0], sizes = [8, 128], strides = [1, 1]} : vector<32x128xf32> to vector<8x128xf32>
      %cst_33 = arith.constant dense<0.000000e+00> : vector<8x128xf32>
      %58 = tpu.matmul %46, %25, %cst_33 {dimension_numbers = #tpu.dot_dimension_numbers<[1], [0], [0], [1], [0, 0, 1, 1], [], []>} : vector<8x32xf32>, vector<32x128xf32>, vector<8x128xf32> -> vector<8x128xf32>
      %59 = arith.addf %57, %58 : vector<8x128xf32>
      %60 = vector.extract_strided_slice %59 {offsets = [0, 0], sizes = [8, 96], strides = [1, 1]} : vector<8x128xf32> to vector<8x96xf32>
      %61 = arith.negf %60 : vector<8x96xf32>
      %62 = math.exp %61 : vector<8x96xf32>
      %cst_34 = arith.constant 1.000000e+00 : f32
      %63 = vector.broadcast %cst_34 : f32 to vector<8x96xf32>
      %64 = arith.addf %63, %62 : vector<8x96xf32>
      %65 = arith.divf %63, %64 : vector<8x96xf32>
      %66 = vector.extract_strided_slice %65 {offsets = [0, 0], sizes = [8, 32], strides = [1, 1]} : vector<8x96xf32> to vector<8x32xf32>
      %67 = vector.extract_strided_slice %65 {offsets = [0, 32], sizes = [8, 32], strides = [1, 1]} : vector<8x96xf32> to vector<8x32xf32>
      %68 = vector.extract_strided_slice %65 {offsets = [0, 64], sizes = [8, 32], strides = [1, 1]} : vector<8x96xf32> to vector<8x32xf32>
      %69 = vector.extract_strided_slice %59 {offsets = [0, 96], sizes = [8, 32], strides = [1, 1]} : vector<8x128xf32> to vector<8x32xf32>
      %70 = math.tanh %69 : vector<8x32xf32>
      %71 = arith.mulf %67, %44 : vector<8x32xf32>
      %72 = arith.mulf %66, %70 : vector<8x32xf32>
      %73 = arith.addf %71, %72 : vector<8x32xf32>
      %74 = math.tanh %73 : vector<8x32xf32>
      %75 = arith.mulf %68, %74 : vector<8x32xf32>
      %76 = vector.extract_strided_slice %75 {offsets = [0, 0], sizes = [1, 32], strides = [1, 1]} : vector<8x32xf32> to vector<1x32xf32>
      %77 = vector.extract_strided_slice %75 {offsets = [1, 0], sizes = [1, 32], strides = [1, 1]} : vector<8x32xf32> to vector<1x32xf32>
      %78 = vector.extract_strided_slice %75 {offsets = [2, 0], sizes = [1, 32], strides = [1, 1]} : vector<8x32xf32> to vector<1x32xf32>
      %79 = vector.extract_strided_slice %75 {offsets = [3, 0], sizes = [1, 32], strides = [1, 1]} : vector<8x32xf32> to vector<1x32xf32>
      %80 = vector.extract_strided_slice %75 {offsets = [4, 0], sizes = [1, 32], strides = [1, 1]} : vector<8x32xf32> to vector<1x32xf32>
      %81 = vector.extract_strided_slice %75 {offsets = [5, 0], sizes = [1, 32], strides = [1, 1]} : vector<8x32xf32> to vector<1x32xf32>
      %82 = vector.extract_strided_slice %75 {offsets = [6, 0], sizes = [1, 32], strides = [1, 1]} : vector<8x32xf32> to vector<1x32xf32>
      %83 = vector.extract_strided_slice %75 {offsets = [7, 0], sizes = [1, 32], strides = [1, 1]} : vector<8x32xf32> to vector<1x32xf32>
      %84 = tpu.concatenate %76, %77, %78, %79, %80, %81, %82, %83 in 1 : vector<1x32xf32>, vector<1x32xf32>, vector<1x32xf32>, vector<1x32xf32>, vector<1x32xf32>, vector<1x32xf32>, vector<1x32xf32>, vector<1x32xf32> -> vector<1x256xf32>
      %c1 = arith.constant 1 : index
      %c0_35 = arith.constant 0 : index
      %85 = vector.load %arg12[%c1, %c0_35] : memref<4x256xf32, #tpu.memory_space<vmem>>, vector<1x256xf32>
      tpu.vector_store %arg12[%c1, %c0_35], %84 {strides = array<i32>} : memref<4x256xf32, #tpu.memory_space<vmem>>, vector<1x256xf32>,
      %86 = vector.extract_strided_slice %24 {offsets = [16, 0], sizes = [8, 128], strides = [1, 1]} : vector<32x128xf32> to vector<8x128xf32>
      %cst_36 = arith.constant dense<0.000000e+00> : vector<8x128xf32>
      %87 = tpu.matmul %75, %25, %cst_36 {dimension_numbers = #tpu.dot_dimension_numbers<[1], [0], [0], [1], [0, 0, 1, 1], [], []>} : vector<8x32xf32>, vector<32x128xf32>, vector<8x128xf32> -> vector<8x128xf32>
      %88 = arith.addf %86, %87 : vector<8x128xf32>
      %89 = vector.extract_strided_slice %88 {offsets = [0, 0], sizes = [8, 96], strides = [1, 1]} : vector<8x128xf32> to vector<8x96xf32>
      %90 = arith.negf %89 : vector<8x96xf32>
      %91 = math.exp %90 : vector<8x96xf32>
      %cst_37 = arith.constant 1.000000e+00 : f32
      %92 = vector.broadcast %cst_37 : f32 to vector<8x96xf32>
      %93 = arith.addf %92, %91 : vector<8x96xf32>
      %94 = arith.divf %92, %93 : vector<8x96xf32>
      %95 = vector.extract_strided_slice %94 {offsets = [0, 0], sizes = [8, 32], strides = [1, 1]} : vector<8x96xf32> to vector<8x32xf32>
      %96 = vector.extract_strided_slice %94 {offsets = [0, 32], sizes = [8, 32], strides = [1, 1]} : vector<8x96xf32> to vector<8x32xf32>
      %97 = vector.extract_strided_slice %94 {offsets = [0, 64], sizes = [8, 32], strides = [1, 1]} : vector<8x96xf32> to vector<8x32xf32>
      %98 = vector.extract_strided_slice %88 {offsets = [0, 96], sizes = [8, 32], strides = [1, 1]} : vector<8x128xf32> to vector<8x32xf32>
      %99 = math.tanh %98 : vector<8x32xf32>
      %100 = arith.mulf %96, %73 : vector<8x32xf32>
      %101 = arith.mulf %95, %99 : vector<8x32xf32>
      %102 = arith.addf %100, %101 : vector<8x32xf32>
      %103 = math.tanh %102 : vector<8x32xf32>
      %104 = arith.mulf %97, %103 : vector<8x32xf32>
      %105 = vector.extract_strided_slice %104 {offsets = [0, 0], sizes = [1, 32], strides = [1, 1]} : vector<8x32xf32> to vector<1x32xf32>
      %106 = vector.extract_strided_slice %104 {offsets = [1, 0], sizes = [1, 32], strides = [1, 1]} : vector<8x32xf32> to vector<1x32xf32>
      %107 = vector.extract_strided_slice %104 {offsets = [2, 0], sizes = [1, 32], strides = [1, 1]} : vector<8x32xf32> to vector<1x32xf32>
      %108 = vector.extract_strided_slice %104 {offsets = [3, 0], sizes = [1, 32], strides = [1, 1]} : vector<8x32xf32> to vector<1x32xf32>
      %109 = vector.extract_strided_slice %104 {offsets = [4, 0], sizes = [1, 32], strides = [1, 1]} : vector<8x32xf32> to vector<1x32xf32>
      %110 = vector.extract_strided_slice %104 {offsets = [5, 0], sizes = [1, 32], strides = [1, 1]} : vector<8x32xf32> to vector<1x32xf32>
      %111 = vector.extract_strided_slice %104 {offsets = [6, 0], sizes = [1, 32], strides = [1, 1]} : vector<8x32xf32> to vector<1x32xf32>
      %112 = vector.extract_strided_slice %104 {offsets = [7, 0], sizes = [1, 32], strides = [1, 1]} : vector<8x32xf32> to vector<1x32xf32>
      %113 = tpu.concatenate %105, %106, %107, %108, %109, %110, %111, %112 in 1 : vector<1x32xf32>, vector<1x32xf32>, vector<1x32xf32>, vector<1x32xf32>, vector<1x32xf32>, vector<1x32xf32>, vector<1x32xf32>, vector<1x32xf32> -> vector<1x256xf32>
      %c2 = arith.constant 2 : index
      %c0_38 = arith.constant 0 : index
      %114 = vector.load %arg12[%c2, %c0_38] : memref<4x256xf32, #tpu.memory_space<vmem>>, vector<1x256xf32>
      tpu.vector_store %arg12[%c2, %c0_38], %113 {strides = array<i32>} : memref<4x256xf32, #tpu.memory_space<vmem>>, vector<1x256xf32>,
      %115 = vector.extract_strided_slice %24 {offsets = [24, 0], sizes = [8, 128], strides = [1, 1]} : vector<32x128xf32> to vector<8x128xf32>
      %cst_39 = arith.constant dense<0.000000e+00> : vector<8x128xf32>
      %116 = tpu.matmul %104, %25, %cst_39 {dimension_numbers = #tpu.dot_dimension_numbers<[1], [0], [0], [1], [0, 0, 1, 1], [], []>} : vector<8x32xf32>, vector<32x128xf32>, vector<8x128xf32> -> vector<8x128xf32>
      %117 = arith.addf %115, %116 : vector<8x128xf32>
      %118 = vector.extract_strided_slice %117 {offsets = [0, 0], sizes = [8, 96], strides = [1, 1]} : vector<8x128xf32> to vector<8x96xf32>
      %119 = arith.negf %118 : vector<8x96xf32>
      %120 = math.exp %119 : vector<8x96xf32>
      %cst_40 = arith.constant 1.000000e+00 : f32
      %121 = vector.broadcast %cst_40 : f32 to vector<8x96xf32>
      %122 = arith.addf %121, %120 : vector<8x96xf32>
      %123 = arith.divf %121, %122 : vector<8x96xf32>
      %124 = vector.extract_strided_slice %123 {offsets = [0, 0], sizes = [8, 32], strides = [1, 1]} : vector<8x96xf32> to vector<8x32xf32>
      %125 = vector.extract_strided_slice %123 {offsets = [0, 32], sizes = [8, 32], strides = [1, 1]} : vector<8x96xf32> to vector<8x32xf32>
      %126 = vector.extract_strided_slice %123 {offsets = [0, 64], sizes = [8, 32], strides = [1, 1]} : vector<8x96xf32> to vector<8x32xf32>
      %127 = vector.extract_strided_slice %117 {offsets = [0, 96], sizes = [8, 32], strides = [1, 1]} : vector<8x128xf32> to vector<8x32xf32>
      %128 = math.tanh %127 : vector<8x32xf32>
      %129 = arith.mulf %125, %102 : vector<8x32xf32>
      %130 = arith.mulf %124, %128 : vector<8x32xf32>
      %131 = arith.addf %129, %130 : vector<8x32xf32>
      %132 = math.tanh %131 : vector<8x32xf32>
      %133 = arith.mulf %126, %132 : vector<8x32xf32>
      %134 = vector.extract_strided_slice %133 {offsets = [0, 0], sizes = [1, 32], strides = [1, 1]} : vector<8x32xf32> to vector<1x32xf32>
      %135 = vector.extract_strided_slice %133 {offsets = [1, 0], sizes = [1, 32], strides = [1, 1]} : vector<8x32xf32> to vector<1x32xf32>
      %136 = vector.extract_strided_slice %133 {offsets = [2, 0], sizes = [1, 32], strides = [1, 1]} : vector<8x32xf32> to vector<1x32xf32>
      %137 = vector.extract_strided_slice %133 {offsets = [3, 0], sizes = [1, 32], strides = [1, 1]} : vector<8x32xf32> to vector<1x32xf32>
      %138 = vector.extract_strided_slice %133 {offsets = [4, 0], sizes = [1, 32], strides = [1, 1]} : vector<8x32xf32> to vector<1x32xf32>
      %139 = vector.extract_strided_slice %133 {offsets = [5, 0], sizes = [1, 32], strides = [1, 1]} : vector<8x32xf32> to vector<1x32xf32>
      %140 = vector.extract_strided_slice %133 {offsets = [6, 0], sizes = [1, 32], strides = [1, 1]} : vector<8x32xf32> to vector<1x32xf32>
      %141 = vector.extract_strided_slice %133 {offsets = [7, 0], sizes = [1, 32], strides = [1, 1]} : vector<8x32xf32> to vector<1x32xf32>
      %142 = tpu.concatenate %134, %135, %136, %137, %138, %139, %140, %141 in 1 : vector<1x32xf32>, vector<1x32xf32>, vector<1x32xf32>, vector<1x32xf32>, vector<1x32xf32>, vector<1x32xf32>, vector<1x32xf32>, vector<1x32xf32> -> vector<1x256xf32>
      %c3 = arith.constant 3 : index
      %c0_41 = arith.constant 0 : index
      %143 = vector.load %arg12[%c3, %c0_41] : memref<4x256xf32, #tpu.memory_space<vmem>>, vector<1x256xf32>
      tpu.vector_store %arg12[%c3, %c0_41], %142 {strides = array<i32>} : memref<4x256xf32, #tpu.memory_space<vmem>>, vector<1x256xf32>,
      %c0_42 = arith.constant 0 : index
      %c0_43 = arith.constant 0 : index
      %144 = vector.load %arg10[%c0_42, %c0_43] : memref<1x10xf32, #tpu.memory_space<vmem>>, vector<1x10xf32>
      %145 = vector.shape_cast %144 : vector<1x10xf32> to vector<1x10xf32>
      %146 = vector.broadcast %145 : vector<1x10xf32> to vector<4x10xf32>
      %c0_44 = arith.constant 0 : index
      %c0_45 = arith.constant 0 : index
      %147 = vector.load %arg11[%c0_44, %c0_45] : memref<4x10xf32, #tpu.memory_space<vmem>>, vector<4x10xf32>
      tpu.vector_store %arg11[%c0_44, %c0_45], %146 {strides = array<i32>} : memref<4x10xf32, #tpu.memory_space<vmem>>, vector<4x10xf32>,
    } else {
    }
    %c0 = arith.constant 0 : index
    %c0_1 = arith.constant 0 : index
    %3 = vector.load %arg12[%c0, %c0_1] : memref<4x256xf32, #tpu.memory_space<vmem>>, vector<4x256xf32>
    %4 = arith.truncf %3 : vector<4x256xf32> to vector<4x256xbf16>
    %c0_2 = arith.constant 0 : index
    %c0_3 = arith.constant 0 : index
    %5 = vector.load %arg6[%c0_2, %c0_3] : memref<256x256xbf16, #tpu.memory_space<vmem>>, vector<256x256xbf16>
    %cst = arith.constant dense<0.000000e+00> : vector<4x256xf32>
    %6 = tpu.matmul %4, %5, %cst {dimension_numbers = #tpu.dot_dimension_numbers<[1], [0], [0], [1], [0, 0, 1, 1], [], []>} : vector<4x256xbf16>, vector<256x256xbf16>, vector<4x256xf32> -> vector<4x256xf32>
    %c0_4 = arith.constant 0 : index
    %c0_5 = arith.constant 0 : index
    %7 = vector.load %arg7[%c0_4, %c0_5] : memref<1x256xf32, #tpu.memory_space<vmem>>, vector<1x256xf32>
    %8 = vector.broadcast %7 : vector<1x256xf32> to vector<4x256xf32>
    %9 = arith.addf %6, %8 : vector<4x256xf32>
    %c0_6 = arith.constant 0 : index
    %c0_7 = arith.constant 0 : index
    %10 = vector.load %arg11[%c0_6, %c0_7] : memref<4x10xf32, #tpu.memory_space<vmem>>, vector<4x10xf32>
    %c0_8 = arith.constant 0 : index
    %c0_9 = arith.constant 0 : index
    %11 = vector.load %arg2[%c0_8, %c0_9] : memref<4x256xf32, #tpu.memory_space<vmem>>, vector<4x256xf32>
    %c0_10 = arith.constant 0 : index
    %c0_11 = arith.constant 0 : index
    %12 = vector.load %arg8[%c0_10, %c0_11] : memref<10x256xf32, #tpu.memory_space<vmem>>, vector<10x256xf32>
    %cst_12 = arith.constant dense<0.000000e+00> : vector<4x10xf32>
    %13 = tpu.matmul %11, %12, %cst_12 {dimension_numbers = #tpu.dot_dimension_numbers<[1], [1], [0], [0], [0, 0, 1, 0], [], []>} : vector<4x256xf32>, vector<10x256xf32>, vector<4x10xf32> -> vector<4x10xf32>
    %c0_13 = arith.constant 0 : index
    %c0_14 = arith.constant 0 : index
    %14 = vector.load %arg9[%c0_13, %c0_14] : memref<10x256xf32, #tpu.memory_space<vmem>>, vector<10x256xf32>
    %cst_15 = arith.constant dense<0.000000e+00> : vector<4x10xf32>
    %15 = tpu.matmul %9, %14, %cst_15 {dimension_numbers = #tpu.dot_dimension_numbers<[1], [1], [0], [0], [0, 0, 1, 0], [], []>} : vector<4x256xf32>, vector<10x256xf32>, vector<4x10xf32> -> vector<4x10xf32>
    %16 = arith.addf %13, %15 : vector<4x10xf32>
    %17 = arith.addf %10, %16 : vector<4x10xf32>
    %c0_16 = arith.constant 0 : index
    %c0_17 = arith.constant 0 : index
    %18 = vector.load %arg11[%c0_16, %c0_17] : memref<4x10xf32, #tpu.memory_space<vmem>>, vector<4x10xf32>
    tpu.vector_store %arg11[%c0_16, %c0_17], %17 {strides = array<i32>} : memref<4x10xf32, #tpu.memory_space<vmem>>, vector<4x10xf32>,
    return
  }
  func.func @transform_0(%arg0: i32) -> (i32, i32) {
    %c0_i32 = arith.constant 0 : i32
    %c0_i32_0 = arith.constant 0 : i32
    %c0_i32_1 = arith.constant 0 : i32
    return %c0_i32, %c0_i32_0 : i32, i32
  }
  func.func @transform_1(%arg0: i32) -> (i32, i32) {
    %c0_i32 = arith.constant 0 : i32
    %c0_i32_0 = arith.constant 0 : i32
    return %c0_i32, %arg0 : i32, i32
  }
  func.func @transform_2(%arg0: i32) -> (i32, i32) {
    %c0_i32 = arith.constant 0 : i32
    %c0_i32_0 = arith.constant 0 : i32
    %c0_i32_1 = arith.constant 0 : i32
    return %c0_i32, %c0_i32_0 : i32, i32
  }
  func.func @transform_3(%arg0: i32) -> (i32, i32) {
    %c0_i32 = arith.constant 0 : i32
    %c0_i32_0 = arith.constant 0 : i32
    %c0_i32_1 = arith.constant 0 : i32
    return %c0_i32, %c0_i32_0 : i32, i32
  }
  func.func @transform_4(%arg0: i32) -> (i32, i32) {
    %c0_i32 = arith.constant 0 : i32
    %c0_i32_0 = arith.constant 0 : i32
    %c0_i32_1 = arith.constant 0 : i32
    return %c0_i32, %c0_i32_0 : i32, i32
  }
  func.func @transform_5(%arg0: i32) -> (i32, i32) {
    %c0_i32 = arith.constant 0 : i32
    %c0_i32_0 = arith.constant 0 : i32
    return %c0_i32, %arg0 : i32, i32
  }
  func.func @transform_6(%arg0: i32) -> (i32, i32) {
    %c0_i32 = arith.constant 0 : i32
    %c0_i32_0 = arith.constant 0 : i32
    return %c0_i32, %arg0 : i32, i32
  }
  func.func @transform_7(%arg0: i32) -> (i32, i32) {
    %c0_i32 = arith.constant 0 : i32
    %c0_i32_0 = arith.constant 0 : i32
    return %c0_i32, %arg0 : i32, i32
  }
  func.func @transform_8(%arg0: i32) -> (i32, i32) {
    %c0_i32 = arith.constant 0 : i32
    %c0_i32_0 = arith.constant 0 : i32
    return %c0_i32, %arg0 : i32, i32
  }
  func.func @transform_9(%arg0: i32) -> (i32, i32) {
    %c0_i32 = arith.constant 0 : i32
    %c0_i32_0 = arith.constant 0 : i32
    %c0_i32_1 = arith.constant 0 : i32
    return %c0_i32, %c0_i32_0 : i32, i32
  }
  func.func @transform_10(%arg0: i32) -> (i32, i32) {
    %c0_i32 = arith.constant 0 : i32
    %c0_i32_0 = arith.constant 0 : i32
    %c0_i32_1 = arith.constant 0 : i32
    return %c0_i32, %c0_i32_0 : i32, i32
  }
}

</mosaic_0001>

<bundles_post_ra>
// kernel: rnn_decoder_forward.1
= control target key start
LH: loop header
LB: loop body
LE: loop exit
PB: predicated region body
PF: predicated region fallthrough
CT: control target
= control target key end

     0   :  { %15 = vsyncpa [#allocation7], 0  ;;  %s2321_s13 = smov 0   ;;  %s2323_s14 = smov 0   ;;  %s2741_s0 = inlined_call_operand.vmem [shape: f32[32,16], index: 0, kind: input, shape index: {}]   ;;  %s2742_s1 = inlined_call_operand.vmem [shape: f32[4,1024], index: 1, kind: input, shape index: {}]   ;;  %s2743_s2 = inlined_call_operand.vmem [shape: f32[16,128], index: 2, kind: input, shape index: {}]   ;;  %s2744_s3 = inlined_call_operand.vmem [shape: f32[32,128], index: 3, kind: input, shape index: {}]   ;;  %s2745_s4 = inlined_call_operand.vmem [shape: f32[1,128], index: 4, kind: input, shape index: {}]   ;;  %s2746_s5 = inlined_call_operand.vmem [shape: bf16[256,1024], index: 5, kind: input, shape index: {}]   ;;  %s2747_s6 = inlined_call_operand.vmem [shape: f32[1,1024], index: 6, kind: input, shape index: {}]   ;;  %s2748_s7 = inlined_call_operand.vmem [shape: f32[10,1024], index: 7, kind: input, shape index: {}]   ;;  %s2749_s8 = inlined_call_operand.vmem [shape: f32[10,1024], index: 8, kind: input, shape index: {}]   ;;  %s2750_s9 = inlined_call_operand.vmem [shape: f32[1,10], index: 9, kind: input, shape index: {}]   ;;  %s2751_s10 = inlined_call_operand.hbm [shape: f32[4,10], index: 10, kind: output, shape index: {}]  }
   0x1   :  { %s2325_s15 = smov 0  }
   0x2 LB: > { %s2337_s16 = sadd.s32 4294967295, %s2256_s15   ;;  %s2340_s17 = sadd.s32 1, %s2256_s15   ;;  %s2256_s15 = sphi %s2325_s15, %s2757_s15   ;;  %s2252_s14 = sphi %s2323_s14, %s2756_s14   ;;  %s2248_s13 = sphi %s2321_s13, %s2755_s13  }
   0x3   : > { %s135_s18 = ssub.s32 %s2256_s15, %s2340_s17  ;;  %s138_s19 = sadd.s32 1, %s2252_s14 }
   0x4   : > { %p136_p0 = scmp.eq.s32.totalorder %s135_s18, 0  ;;  %p145_p1 = scmp.ne.s32.totalorder %s2252_s14, %s2248_s13 }
   0x5   : > { %p146_p2 = scmp.eq.s32.totalorder %s2256_s15, 0  ;;  %p1898_p4 = scmp.ge.s32.totalorder %s2256_s15, 4 }
   0x6   : > { %s2349_s20 = scalar_select %p136_p0, %s2252_s14, %s138_s19  }
   0x7   : > { %p2351_p3 = por %p146_p2, %p145_p1  ;;  %306 = sbr.rel (%p1898_p4) target bundleno = 64 (0x40), region = 36 }
   0xe   : > { %318 = sbr.rel (!%p2351_p3) target bundleno = 50 (0x32), region = 44  ;;  %s320_s22 = sand.u32 (%p2351_p3), 1, %s2252_s14  }
   0xf   : > { %s1965_s23 = sshll.u32 (%p2351_p3), %s2256_s15, 3  ;;  %s1899_s24 = sshll.u32 (%p2351_p3), %s320_s22, 8 }
  0x10   : > { %s2363_s27 = scalar_lea.vmem (%p2351_p3), %s2746_s5, %s1965_s23  ;;  %s2368_s28 = scalar_lea.vmem (%p2351_p3), [#allocation3], %s1899_s24 }
  0x11   : > { %v415_v0 = vld [vmem:[%s2363_s27] sm:$0xff] (%p2351_p3) }
  0x12   : > { %v417_v1 = vld [vmem:[%s2363_s27 + $0x20] sm:$0xff] (%p2351_p3)  ;;  %416 = vst [vmem:[%s2368_s28] sm:$0xff] (%p2351_p3), %v415_v0 }
  0x13   : > { %v419_v2 = vld [vmem:[%s2363_s27 + $0x40] sm:$0xff] (%p2351_p3)  ;;  %418 = vst [vmem:[%s2368_s28 + $0x8] sm:$0xff] (%p2351_p3), %v417_v1 }
  0x14   : > { %420 = vst [vmem:[%s2368_s28 + $0x10] sm:$0xff] (%p2351_p3), %v419_v2  ;;  %v421_v3 = vld [vmem:[%s2363_s27 + $0x60] sm:$0xff] (%p2351_p3) }
  0x15   : > { %v423_v4 = vld [vmem:[%s2363_s27 + $0x80] sm:$0xff]  ;;  %422 = vst [vmem:[%s2368_s28 + $0x18] sm:$0xff] %v421_v3 }
  0x16   : > { %v425_v5 = vld [vmem:[%s2363_s27 + $0xa0] sm:$0xff]  ;;  %424 = vst [vmem:[%s2368_s28 + $0x20] sm:$0xff] %v423_v4 }
  0x17   : > { %426 = vst [vmem:[%s2368_s28 + $0x28] sm:$0xff] %v425_v5  ;;  %v427_v6 = vld [vmem:[%s2363_s27 + $0xc0] sm:$0xff] }
  0x18   : > { %v429_v7 = vld [vmem:[%s2363_s27 + $0xe0] sm:$0xff]  ;;  %428 = vst [vmem:[%s2368_s28 + $0x30] sm:$0xff] %v427_v6 }
  0x19   : > { %v431_v8 = vld [vmem:[%s2363_s27 + $0x100] sm:$0xff]  ;;  %430 = vst [vmem:[%s2368_s28 + $0x38] sm:$0xff] %v429_v7 }
  0x1a   : > { %432 = vst [vmem:[%s2368_s28 + $0x40] sm:$0xff] %v431_v8  ;;  %v433_v9 = vld [vmem:[%s2363_s27 + $0x120] sm:$0xff] }
  0x1b   : > { %v435_v10 = vld [vmem:[%s2363_s27 + $0x140] sm:$0xff]  ;;  %434 = vst [vmem:[%s2368_s28 + $0x48] sm:$0xff] %v433_v9 }
  0x1c   : > { %v437_v11 = vld [vmem:[%s2363_s27 + $0x160] sm:$0xff]  ;;  %436 = vst [vmem:[%s2368_s28 + $0x50] sm:$0xff] %v435_v10 }
  0x1d   : > { %438 = vst [vmem:[%s2368_s28 + $0x58] sm:$0xff] %v437_v11  ;;  %v439_v12 = vld [vmem:[%s2363_s27 + $0x180] sm:$0xff] }
  0x1e   : > { %v441_v13 = vld [vmem:[%s2363_s27 + $0x1a0] sm:$0xff]  ;;  %440 = vst [vmem:[%s2368_s28 + $0x60] sm:$0xff] %v439_v12 }
  0x1f   : > { %v443_v14 = vld [vmem:[%s2363_s27 + $0x1c0] sm:$0xff]  ;;  %442 = vst [vmem:[%s2368_s28 + $0x68] sm:$0xff] %v441_v13 }
  0x20   : > { %444 = vst [vmem:[%s2368_s28 + $0x70] sm:$0xff] %v443_v14  ;;  %v445_v15 = vld [vmem:[%s2363_s27 + $0x1e0] sm:$0xff] }
  0x21   : > { %v447_v16 = vld [vmem:[%s2363_s27 + $0x200] sm:$0xff]  ;;  %446 = vst [vmem:[%s2368_s28 + $0x78] sm:$0xff] %v445_v15 }
  0x22   : > { %v449_v17 = vld [vmem:[%s2363_s27 + $0x220] sm:$0xff]  ;;  %448 = vst [vmem:[%s2368_s28 + $0x80] sm:$0xff] %v447_v16 }
  0x23   : > { %450 = vst [vmem:[%s2368_s28 + $0x88] sm:$0xff] %v449_v17  ;;  %v451_v18 = vld [vmem:[%s2363_s27 + $0x240] sm:$0xff] }
  0x24   : > { %v453_v19 = vld [vmem:[%s2363_s27 + $0x260] sm:$0xff]  ;;  %452 = vst [vmem:[%s2368_s28 + $0x90] sm:$0xff] %v451_v18 }
  0x25   : > { %v455_v20 = vld [vmem:[%s2363_s27 + $0x280] sm:$0xff]  ;;  %454 = vst [vmem:[%s2368_s28 + $0x98] sm:$0xff] %v453_v19 }
  0x26   : > { %456 = vst [vmem:[%s2368_s28 + $0xa0] sm:$0xff] %v455_v20  ;;  %v457_v21 = vld [vmem:[%s2363_s27 + $0x2a0] sm:$0xff] }
  0x27   : > { %v459_v22 = vld [vmem:[%s2363_s27 + $0x2c0] sm:$0xff]  ;;  %458 = vst [vmem:[%s2368_s28 + $0xa8] sm:$0xff] %v457_v21 }
  0x28   : > { %v461_v23 = vld [vmem:[%s2363_s27 + $0x2e0] sm:$0xff]  ;;  %460 = vst [vmem:[%s2368_s28 + $0xb0] sm:$0xff] %v459_v22 }
  0x29   : > { %462 = vst [vmem:[%s2368_s28 + $0xb8] sm:$0xff] %v461_v23  ;;  %v463_v24 = vld [vmem:[%s2363_s27 + $0x300] sm:$0xff] }
  0x2a   : > { %v465_v25 = vld [vmem:[%s2363_s27 + $0x320] sm:$0xff]  ;;  %464 = vst [vmem:[%s2368_s28 + $0xc0] sm:$0xff] %v463_v24 }
  0x2b   : > { %v467_v26 = vld [vmem:[%s2363_s27 + $0x340] sm:$0xff]  ;;  %466 = vst [vmem:[%s2368_s28 + $0xc8] sm:$0xff] %v465_v25 }
  0x2c   : > { %468 = vst [vmem:[%s2368_s28 + $0xd0] sm:$0xff] %v467_v26  ;;  %v469_v27 = vld [vmem:[%s2363_s27 + $0x360] sm:$0xff] }
  0x2d   : > { %v471_v28 = vld [vmem:[%s2363_s27 + $0x380] sm:$0xff]  ;;  %470 = vst [vmem:[%s2368_s28 + $0xd8] sm:$0xff] %v469_v27 }
  0x2e   : > { %v473_v29 = vld [vmem:[%s2363_s27 + $0x3a0] sm:$0xff]  ;;  %472 = vst [vmem:[%s2368_s28 + $0xe0] sm:$0xff] %v471_v28 }
  0x2f   : > { %474 = vst [vmem:[%s2368_s28 + $0xe8] sm:$0xff] %v473_v29  ;;  %v475_v30 = vld [vmem:[%s2363_s27 + $0x3c0] sm:$0xff] }
  0x30   : > { %v477_v31 = vld [vmem:[%s2363_s27 + $0x3e0] sm:$0xff]  ;;  %476 = vst [vmem:[%s2368_s28 + $0xf0] sm:$0xff] %v475_v30 }
  0x31   : > { %478 = vst [vmem:[%s2368_s28 + $0xf8] sm:$0xff] %v477_v31 }
  0x32 PF: > { %492 = sbr.rel (!%p2351_p3) target bundleno = 57 (0x39), region = 86  ;;  %s494_s29 = sand.u32 (%p2351_p3), 1, %s2252_s14  }
  0x33   : > { %s1966_s30 = sshll.u32 (%p2351_p3), %s2256_s15, 4  ;;  %s1902_s11 = sshll.u32 (%p2351_p3), %s494_s29, 5 }
  0x34   : > { %s499_s19 = scalar_lea.vmem (%p2351_p3), %s2748_s7, %s1966_s30  ;;  %s496_s22 = scalar_lea.vmem (%p2351_p3), [#allocation4], %s1902_s11 }
  0x35   : > { %v512_v32 = vld [vmem:[%s499_s19] sm:$0xff] (%p2351_p3)  ;;  %v514_v33 = vld [vmem:[%s499_s19 + $0x8] sm:$0xff] (%p2351_p3) }
  0x36   : > { %v516_v34 = vld [vmem:[%s499_s19 + $0x40] sm:$0xff] (%p2351_p3)  ;;  %513 = vst [vmem:[%s496_s22] sm:$0xff] (%p2351_p3), %v512_v32  ;;  %515 = vst [vmem:[%s496_s22 + $0x8] sm:$0xff] (%p2351_p3), %v514_v33  ;;  %v518_v35 = vld [vmem:[%s499_s19 + $0x48] sm:$0xff] (%p2351_p3) }
  0x37   : > { %517 = vst [vmem:[%s496_s22 + $0x10] sm:$0xff] (%p2351_p3), %v516_v34  ;;  %519 = vst [vmem:[%s496_s22 + $0x18] sm:$0xff] (%p2351_p3), %v518_v35 }
  0x39 PF: > { %525 = sbr.rel (!%p2351_p3) target bundleno = 64 (0x40), region = 109  ;;  %s527_s23 = sand.u32 (%p2351_p3), 1, %s2252_s14  }
  0x3a   : > { %s1967_s24 = sshll.u32 (%p2351_p3), %s2256_s15, 4  ;;  %s1905_s25 = sshll.u32 (%p2351_p3), %s527_s23, 5 }
  0x3b   : > { %s532_s28 = scalar_lea.vmem (%p2351_p3), %s2749_s8, %s1967_s24  ;;  %s529_s29 = scalar_lea.vmem (%p2351_p3), [#allocation5], %s1905_s25 }
  0x3c   : > { %v545_v36 = vld [vmem:[%s532_s28] sm:$0xff] (%p2351_p3)  ;;  %v547_v37 = vld [vmem:[%s532_s28 + $0x8] sm:$0xff] (%p2351_p3) }
  0x3d   : > { %v549_v38 = vld [vmem:[%s532_s28 + $0x40] sm:$0xff] (%p2351_p3)  ;;  %546 = vst [vmem:[%s529_s29] sm:$0xff] (%p2351_p3), %v545_v36  ;;  %548 = vst [vmem:[%s529_s29 + $0x8] sm:$0xff] (%p2351_p3), %v547_v37  ;;  %v551_v39 = vld [vmem:[%s532_s28 + $0x48] sm:$0xff] (%p2351_p3) }
  0x3e   : > { %550 = vst [vmem:[%s529_s29 + $0x10] sm:$0xff] (%p2351_p3), %v549_v38  ;;  %552 = vst [vmem:[%s529_s29 + $0x18] sm:$0xff] (%p2351_p3), %v551_v39 }
  0x40 PF: > { %p1908_p5 = scmp.ge.s32.totalorder %s2256_s15, 1  ;;  %p557_p6 = scmp.lt.s32.totalorder %s2256_s15, 5 }
  0x42   : > { %p558_p7 = pnand %p1908_p5, %p557_p6 }
  0x43   : > { %s564_s21 = sand.u32 (!%p558_p7), 1, %s2248_s13   ;;  %s1912_s30 = sshll.u32 (!%p558_p7), %s2337_s16, 1 }
  0x44   : > { %561 = sbr.rel (%p558_p7) target bundleno = 3433 (0xd69), region = 132  ;;  %s1909_s11 = sshll.u32 (!%p558_p7), %s564_s21, 8 }
  0x45   : > { %s1910_s12 = sshll.u32 (!%p558_p7), %s564_s21, 5  ;;  %p628_p8 = scmp.lt.s32.totalorder (!%p558_p7), %s1912_s30, 7 }
  0x46   : > { %s2461_s26 = scalar_lea.vmem (!%p558_p7), [#allocation3], %s1909_s11  ;;  %s2463_s13 = scalar_lea.vmem (!%p558_p7), [#allocation4], %s1910_s12 }
  0x47   : > { %s2465_s27 = scalar_lea.vmem (!%p558_p7), [#allocation5], %s1910_s12  ;;  %p1915_p9 = scmp.ne.s32.totalorder (!%p558_p7), %s2337_s16, 0 }
  0x4b   : > { %s2759_s30 = smov (!%p628_p8, %s1912_s30), 7  ;;  %644 = sbr.rel (%p1915_p9) target bundleno = 2913 (0xb61), region = 148 }
  0x4c   : > { %s1913_s18 = sshll.u32 %s2759_s30, 2  ;;  %s637_s23 = scalar_lea.vmem %s2747_s6, %s2759_s30  ;;  %v649_v40 = vld [vmem:[%s2743_s2] sm:$0xff] (!%p1915_p9)  ;;  %v650_v41 = vld [vmem:[%s2743_s2 + $0x8] sm:$0xff] (!%p1915_p9)  ;;  %vm658_vm0 = vcmask (!%p1915_p9), 130048   ;;  %v2258_v43 = vmov (!%p1915_p9), 0.0|0.0   ;;  %v758_v48 = vld [vmem:[%s2744_s3 + $0x10] sm:$0xff] (!%p1915_p9) }
  0x4d   : > { %s2459_s25 = scalar_lea.vmem %s2742_s1, %s1913_s18  ;;  %v756_v42 = vld [vmem:[%s2744_s3] sm:$0xff] (!%p1915_p9)  ;;  %2052 = vmatprep.subr.bf16.mxu1 (!%p1915_p9), %v2258_v43  ;;  %v2048_v44 = vpack.c.bf16 (!%p1915_p9), %v650_v41, %v649_v40  ;;  %v757_v45 = vld [vmem:[%s2744_s3 + $0x8] sm:$0xff] (!%p1915_p9)  ;;  %v759_v49 = vld [vmem:[%s2744_s3 + $0x18] sm:$0xff] (!%p1915_p9)  ;;  %vm2259_vm1 = vmmov (!%p1915_p9), 0   ;;  %v2260_v50 = vmov (!%p1915_p9), 0.0   ;;  %s2261_s24 = smov (!%p1915_p9), 32  }
  0x4e   : > { %v645_v46 = vld [vmem:[%s2741_s0] sm:$0xff] (!%p1915_p9)  ;;  %v2484_v47 = vpack.c.bf16 (!%p1915_p9), %v757_v45, %v756_v42  ;;  %2012 = vmatprep.mubr.msk.f32.mxu1 (!%p1915_p9), %vm2259_vm1, %v2260_v50  ;;  %v646_v51 = vld [vmem:[%s2741_s0 + $0x8] sm:$0xff] (!%p1915_p9)  ;;  %v2056_v52 = vpack.c.bf16 (!%p1915_p9), %v759_v49, %v758_v48  ;;  %v647_v6 = vld [vmem:[%s2741_s0 + $0x10] sm:$0xff] (!%p1915_p9)  ;;  %s2262_s19 = smov (!%p1915_p9), 64   ;;  %vm760_vm2 = vcmask (!%p1915_p9), 261120   ;;  %s2263_s22 = smov (!%p1915_p9), 96  }
  0x4f   : > { %1998 = vmatprep.mubr.msk.f32.mxu0 (!%p1915_p9), %vm658_vm0, %v645_v46  ;;  %2049 = vmatprep.subr.bf16.mxu0 (!%p1915_p9), %v2048_v44  ;;  %v2511_v53 = vld [vmem:[%s2745_s4] ss:$0 sm:$0xff] (!%p1915_p9)  ;;  %v648_v7 = vld [vmem:[%s2741_s0 + $0x18] sm:$0xff] (!%p1915_p9)  ;;  %vm1378_vm3 = vcmask (!%p1915_p9), 76800   ;;  %vm888_vm4 = vcmask (!%p1915_p9), 523264   ;;  %vm890_vm5 = vcmask (!%p1915_p9), 785408  }
  0x50   : > { %2054 = vmatpush3.bf16.msra.mxu1 (!%p1915_p9), %v2484_v47  ;;  %2051 = vmatpush3.bf16.msra.mxu0 (!%p1915_p9), %v2048_v44 }
  0x51   : > { %2055 = vmatprep.subr.bf16.mxu1 (!%p1915_p9), %v2258_v43  ;;  %2058 = vmatprep.subr.bf16.mxu0 (!%p1915_p9), %v2258_v43 }
  0x53   : > { %1999 = vmatmul.mubr.msk.f32.vlgmr.msra.gmra.mrb[0].mxu0 %vm658_vm0, %v646_v51 }
  0x54   : > { %2057 = vmatpush3.bf16.msra.mxu1 %v2056_v52  ;;  %2060 = vmatpush3.bf16.msra.mxu0 %v2484_v47 }
  0x55   : > { %2061 = vmatprep.subr.bf16.mxu0 %v2258_v43  ;;  %2064 = vmatprep.subr.bf16.mxu1 %v2258_v43 }
  0x56   : > { %2001 = vmatprep.mubr.msk.f32.mxu0 %vm658_vm0, %v647_v6 }
  0x57   : > { %2013 = vmatmul.mubr.f32.vlgmr.msra.gmra.mrb[0].mxu1 %v2260_v50  ;;  %2002 = vmatmul.mubr.msk.f32.gmra.mrb[2].mxu0 %vm658_vm0, %v648_v7 }
  0x58   : > { %2063 = vmatpush3.bf16.msra.mxu0 %v2056_v52  ;;  %2066 = vmatpush3.bf16.msra.mxu1 %v2484_v47 }
  0x59   : > { %2067 = vmatprep.subr.bf16.mxu1 %v2258_v43  ;;  %2034 = vmatprep.mubr.msk.f32.mxu1 %vm2259_vm1, %v2260_v50 }
  0x5a   : > { %2070 = vmatprep.subr.bf16.mxu0 %v2258_v43  ;;  %2023 = vmatprep.mubr.msk.f32.mxu0 %vm2259_vm1, %v2260_v50 }
  0x5c   : > { %2069 = vmatpush3.bf16.msra.mxu1 %v2056_v52 }
 0x126   : > { %v2000_v54 = vpop.f32.mrb[0].mxu0 }
 0x127   : > { %v737_v55 = vpop.f32.mrb[1].mxu0  ;;  %v743_v14 = vadd.f32 %v2000_v54, %v2511_v53 }
 0x128   : > { %v738_v56 = vadd.f32 %v2511_v53, %v737_v55 }
 0x12a   : > { %v830_v57 = vpop.f32.mrb[0].mxu1  ;;  %v2530_v11 = vpop.f32.mrb[2].mxu0 }
 0x12b   : > { %v834_v58 = vadd.f32 %v830_v57, %v738_v56  ;;  %v2014_v59 = vpop.f32.mrb[1].mxu1  ;;  %v747_v12 = vpop.f32.mrb[3].mxu0 }
 0x12c   : > { %v748_v32 = vadd.f32 %v2511_v53, %v747_v12 }
 0x12d   : > { %2122 = vtanh.f32 %v834_v58  ;;  %v1921_v61 = vmul.f32 -1.442695, %v834_v58 }
 0x12f   : > { %2124 = vpow2.f32 %v1921_v61 }
 0x137   : > { %v2123_v60 = vpop.eup %2122 }
 0x138   : > { %844 = vrot.lane.b32.xlu0 %v2123_v60, %s2261_s24 }
 0x139   : > { %v2125_v62 = vpop.eup %2124 }
 0x13a   : > { %v838_v63 = vadd.f32 1.0, %v2125_v62 }
 0x13c   : > { %2126 = vrcp.f32 %v838_v63 }
 0x146   : > { %v2127_v0 = vpop.eup %2126 }
 0x147   : > { %v842_v3 = vmul.f32 0.0, %v2127_v0 }
 0x1aa   : > { %v845_v1 = vpop.permute.xlu0 %844 }
 0x1ab   : > { %v847_v2 = vmul.f32 %v2127_v0, %v845_v1 }
 0x1ad   : > { %849 = vrot.lane.b32.xlu0 %v847_v2, %s2261_s24 }
 0x21f   : > { %v850_v4 = vpop.permute.xlu0 %849 }
 0x220   : > { %v852_v5 = vadd.f32 %v850_v4, %v842_v3 }
 0x222   : > { %2128 = vtanh.f32 %v852_v5 }
 0x22c   : > { %v2129_v8 = vpop.eup %2128 }
 0x22d   : > { %855 = vrot.lane.b32.xlu1 %v2129_v8, %s2261_s24 }
 0x29f   : > { %v856_v9 = vpop.permute.xlu1 %855 }
 0x2a0   : > { %v2526_v10 = vmul.f32 %v2127_v0, %v856_v9 }
 0x2a2   : > { %860 = vrot.lane.b32.xlu1 %v2526_v10, %s2262_s19  ;;  %v863_v62 = vrot.slane %v2526_v10, 1  ;;  %v883_v2 = vrot.slane %v2526_v10, 7  ;;  %v873_v9 = vrot.slane %v2526_v10, 4 }
 0x314   : > { %v2532_v13 = vpop.permute.xlu1 %860 }
 0x315   : > { %2024 = vmatmul.mubr.msk.f32.vlgmr.msra.gmra.mrb[4].mxu0 %vm760_vm2, %v2532_v13 }
 0x316   : > { %2072 = vmatpush3.bf16.msra.mxu0 %v2484_v47  ;;  %2045 = vmatprep.mubr.msk.f32.mxu0 %vm2259_vm1, %v2260_v50  ;;  %v753_v50 = vadd.f32 %v2530_v11, %v2511_v53  ;;  %v877_v53 = vrot.slane %v2526_v10, 5 }
 0x317   : > { %2073 = vmatprep.subr.bf16.mxu0 %v2258_v43 }
 0x31a   : > { %2075 = vmatpush3.bf16.msra.mxu0 %v2056_v52 }
 0x3e8   : > { %v986_v15 = vpop.f32.mrb[4].mxu0 }
 0x3e9   : > { %v990_v16 = vadd.f32 %v986_v15, %v743_v14  ;;  %v2025_v17 = vpop.f32.mrb[5].mxu0  ;;  %v869_v15 = vrot.slane %v2526_v10, 3 }
 0x3eb   : > { %2130 = vtanh.f32 %v990_v16  ;;  %v1923_v19 = vmul.f32 -1.442695, %v990_v16 }
 0x3ed   : > { %2132 = vpow2.f32 %v1923_v19 }
 0x3f5   : > { %v2131_v18 = vpop.eup %2130 }
 0x3f6   : > { %1000 = vrot.lane.b32.xlu0 %v2131_v18, %s2261_s24 }
 0x3f7   : > { %v2133_v20 = vpop.eup %2132 }
 0x3f8   : > { %v994_v21 = vadd.f32 1.0, %v2133_v20 }
 0x3fa   : > { %2134 = vrcp.f32 %v994_v21 }
 0x404   : > { %v2135_v22 = vpop.eup %2134 }
 0x405   : > { %v998_v25 = vmul.f32 %v2135_v22, %v852_v5 }
 0x468   : > { %v1001_v23 = vpop.permute.xlu0 %1000 }
 0x469   : > { %v1003_v24 = vmul.f32 %v2135_v22, %v1001_v23 }
 0x46b   : > { %1005 = vrot.lane.b32.xlu1 %v1003_v24, %s2261_s24 }
 0x4dd   : > { %v1006_v26 = vpop.permute.xlu1 %1005 }
 0x4de   : > { %v1008_v27 = vadd.f32 %v1006_v26, %v998_v25 }
 0x4e0   : > { %2136 = vtanh.f32 %v1008_v27 }
 0x4ea   : > { %v2137_v28 = vpop.eup %2136 }
 0x4eb   : > { %1011 = vrot.lane.b32.xlu0 %v2137_v28, %s2261_s24  ;;  %v1928_v28 = vld [vmem:[%s2750_s9] ss:$0 sm:$0xff] }
 0x4ec   : > { %1379 = vst.msk [vmem:[#allocation6] sm:$0xf] %vm1378_vm3, %v1928_v28 }
 0x55d   : > { %v1012_v29 = vpop.permute.xlu0 %1011 }
 0x55e   : > { %v2543_v30 = vmul.f32 %v2135_v22, %v1012_v29 }
 0x560   : > { %1016 = vrot.lane.b32.xlu1 %v2543_v30, %s2262_s19  ;;  %v1029_v63 = vrot.slane %v2543_v30, 4  ;;  %v1039_v3 = vrot.slane %v2543_v30, 7  ;;  %v1019_v11 = vrot.slane %v2543_v30, 1  ;;  %v1033_v12 = vrot.slane %v2543_v30, 5 }
 0x561   : > { %v1025_v16 = vrot.slane %v2543_v30, 3 }
 0x5d2   : > { %v2547_v31 = vpop.permute.xlu1 %1016 }
 0x5d3   : > { %2035 = vmatmul.mubr.msk.f32.vlgmr.msra.gmra.mrb[2].mxu1 %vm760_vm2, %v2547_v31 }
 0x6a6   : > { %v1137_v33 = vpop.f32.mrb[2].mxu1 }
 0x6a7   : > { %v1141_v34 = vadd.f32 %v1137_v33, %v748_v32  ;;  %v2036_v35 = vpop.f32.mrb[3].mxu1 }
 0x6a9   : > { %2138 = vtanh.f32 %v1141_v34  ;;  %v1925_v37 = vmul.f32 -1.442695, %v1141_v34 }
 0x6ab   : > { %2140 = vpow2.f32 %v1925_v37 }
 0x6b3   : > { %v2139_v36 = vpop.eup %2138 }
 0x6b4   : > { %1151 = vrot.lane.b32.xlu0 %v2139_v36, %s2261_s24  ;;  %v2264_v36 = vmov 1966171168  }
 0x6b5   : > { %v2141_v38 = vpop.eup %2140  ;;  %v899_v37 = vunpack.c.l.s4 %v2264_v36 }
 0x6b6   : > { %v1145_v39 = vadd.f32 1.0, %v2141_v38  ;;  %v901_v38 = vlaneseq }
 0x6b8   : > { %2142 = vrcp.f32 %v1145_v39  ;;  %vm2635_vm6 = vcmp.lt.s32.totalorder %v901_v38, 256 }
 0x6c2   : > { %v2143_v40 = vpop.eup %2142 }
 0x6c3   : > { %v1149_v43 = vmul.f32 %v2143_v40, %v1008_v27 }
 0x726   : > { %v1152_v41 = vpop.permute.xlu0 %1151 }
 0x727   : > { %v1154_v42 = vmul.f32 %v2143_v40, %v1152_v41  ;;  %v881_v41 = vrot.slane %v2526_v10, 6 }
 0x729   : > { %1156 = vrot.lane.b32.xlu1 %v1154_v42, %s2261_s24 }
 0x79b   : > { %v1157_v44 = vpop.permute.xlu1 %1156 }
 0x79c   : > { %v1159_v45 = vadd.f32 %v1157_v44, %v1149_v43  ;;  %v900_v43 = vunpack.c.0.s8 %v899_v37  ;;  %v902_v44 = vshrl.u32 %v901_v38, 7 }
 0x79e   : > { %2144 = vtanh.f32 %v1159_v45 }
 0x7a8   : > { %v2145_v46 = vpop.eup %2144 }
 0x7a9   : > { %1162 = vrot.lane.b32.xlu0 %v2145_v46, %s2261_s24 }
 0x81b   : > { %v1163_v47 = vpop.permute.xlu0 %1162 }
 0x81c   : > { %v2555_v48 = vmul.f32 %v2143_v40, %v1163_v47  ;;  %v867_v47 = vrot.slane %v2526_v10, 2  ;;  %v1023_v10 = vrot.slane %v2543_v30, 2 }
 0x81e   : > { %1167 = vrot.lane.b32.xlu1 %v2555_v48, %s2262_s19  ;;  %v1170_v0 = vrot.slane %v2555_v48, 1  ;;  %v1184_v1 = vrot.slane %v2555_v48, 5  ;;  %v1190_v4 = vrot.slane %v2555_v48, 7  ;;  %v1180_v14 = vrot.slane %v2555_v48, 4 }
 0x81f   : > { %v1176_v17 = vrot.slane %v2555_v48, 3 }
 0x890   : > { %v2559_v49 = vpop.permute.xlu1 %1167 }
 0x891   : > { %2046 = vmatmul.mubr.msk.f32.vlgmr.msra.gmra.mrb[6].mxu0 %vm760_vm2, %v2559_v49 }
 0x964   : > { %v1288_v51 = vpop.f32.mrb[6].mxu0 }
 0x965   : > { %v1292_v52 = vadd.f32 %v1288_v51, %v753_v50  ;;  %v2047_v54 = vpop.f32.mrb[7].mxu0  ;;  %v1037_v51 = vrot.slane %v2543_v30, 6 }
 0x967   : > { %2146 = vtanh.f32 %v1292_v52  ;;  %v1927_v56 = vmul.f32 -1.442695, %v1292_v52  ;;  %v903_v52 = vsub.s32 %v900_v43, %v902_v44 }
 0x969   : > { %2148 = vpow2.f32 %v1927_v56 }
 0x971   : > { %v2147_v55 = vpop.eup %2146 }
 0x972   : > { %1302 = vrot.lane.b32.xlu0 %v2147_v55, %s2261_s24 }
 0x973   : > { %v2149_v57 = vpop.eup %2148 }
 0x974   : > { %v1296_v58 = vadd.f32 1.0, %v2149_v57 }
 0x976   : > { %2150 = vrcp.f32 %v1296_v58 }
 0x980   : > { %v2151_v59 = vpop.eup %2150 }
 0x981   : > { %v1300_v5 = vmul.f32 %v2151_v59, %v1159_v45 }
 0x9e4   : > { %v1303_v60 = vpop.permute.xlu0 %1302 }
 0x9e5   : > { %v1305_v61 = vmul.f32 %v2151_v59, %v1303_v60 }
 0x9e7   : > { %1307 = vrot.lane.b32.xlu1 %v1305_v61, %s2261_s24 }
 0x9eb   : > { %864 = vrot.lane.b32.xlu1 %v863_v62, %s2263_s22  ;;  %v1188_v62 = vrot.slane %v2555_v48, 6 }
 0x9ef   : > { %878 = vrot.lane.b32.xlu1 %v877_v53, %s2263_s22 }
 0x9f3   : > { %1030 = vrot.lane.b32.xlu1 %v1029_v63, %s2262_s19 }
 0x9f7   : > { %1171 = vrot.lane.b32.xlu1 %v1170_v0, %s2263_s22 }
 0x9fb   : > { %1185 = vrot.lane.b32.xlu1 %v1184_v1, %s2263_s22 }
 0x9ff   : > { %884 = vrot.lane.b32.xlu1 %v883_v2, %s2261_s24 }
 0xa03   : > { %1040 = vrot.lane.b32.xlu1 %v1039_v3, %s2261_s24 }
 0xa07   : > { %1191 = vrot.lane.b32.xlu1 %v1190_v4, %s2261_s24 }
 0xa59   : > { %v1308_v6 = vpop.permute.xlu1 %1307 }
 0xa5a   : > { %v1310_v7 = vadd.f32 %v1308_v6, %v1300_v5  ;;  %v1174_v6 = vrot.slane %v2555_v48, 2 }
 0xa5c   : > { %2152 = vtanh.f32 %v1310_v7 }
 0xa5d   : > { %v865_v18 = vpop.permute.xlu1 %864 }
 0xa5e   : > { %v887_v45 = vsel %vm760_vm2, %v2532_v13, %v865_v18 }
 0xa5f   : > { %v889_v55 = vsel %vm888_vm4, %v887_v45, %v867_v47 }
 0xa61   : > { %v879_v19 = vpop.permute.xlu1 %878 }
 0xa65   : > { %v1031_v20 = vpop.permute.xlu1 %1030 }
 0xa66   : > { %v2153_v8 = vpop.eup %2152 }
 0xa67   : > { %1313 = vrot.lane.b32.xlu0 %v2153_v8, %s2261_s24 }
 0xa69   : > { %v1172_v24 = vpop.permute.xlu1 %1171 }
 0xa6b   : > { %874 = vrot.lane.b32.xlu0 %v873_v9, %s2262_s19 }
 0xa6d   : > { %v1186_v33 = vpop.permute.xlu1 %1185 }
 0xa6f   : > { %1020 = vrot.lane.b32.xlu0 %v1019_v11, %s2263_s22 }
 0xa71   : > { %v885_v40 = vpop.permute.xlu1 %884 }
 0xa73   : > { %1034 = vrot.lane.b32.xlu0 %v1033_v12, %s2263_s22 }
 0xa75   : > { %v1041_v58 = vpop.permute.xlu1 %1040 }
 0xa77   : > { %1181 = vrot.lane.b32.xlu0 %v1180_v14, %s2262_s19 }
 0xa79   : > { %v1192_v7 = vpop.permute.xlu1 %1191 }
 0xa7b   : > { %870 = vrot.lane.b32.xlu0 %v869_v15, %s2261_s24 }
 0xa7f   : > { %1026 = vrot.lane.b32.xlu0 %v1025_v16, %s2261_s24 }
 0xa83   : > { %1177 = vrot.lane.b32.xlu0 %v1176_v17, %s2261_s24 }
 0xad9   : > { %v1314_v21 = vpop.permute.xlu0 %1313 }
 0xada   : > { %v2598_v22 = vmul.f32 %v2151_v59, %v1314_v21 }
 0xadc   : > { %1318 = vrot.lane.b32.xlu0 %v2598_v22, %s2262_s19  ;;  %v1321_v23 = vrot.slane %v2598_v22, 1  ;;  %v1331_v26 = vrot.slane %v2598_v22, 4  ;;  %v1335_v27 = vrot.slane %v2598_v22, 5  ;;  %v1327_v32 = vrot.slane %v2598_v22, 3 }
 0xadd   : > { %v875_v25 = vpop.permute.xlu0 %874  ;;  %v1341_v34 = vrot.slane %v2598_v22, 7 }
 0xade   : > { %1322 = vrot.lane.b32.xlu1 %v1321_v23, %s2263_s22  ;;  %v892_v39 = vsel %vm760_vm2, %v875_v25, %v879_v19 }
 0xadf   : > { %v893_v46 = vsel %vm888_vm4, %v892_v39, %v881_v41 }
 0xae0   : > { %1332 = vrot.lane.b32.xlu0 %v1331_v26, %s2262_s19  ;;  %v894_v13 = vsel %vm890_vm5, %v893_v46, %v885_v40  ;;  %v1339_v26 = vrot.slane %v2598_v22, 6 }
 0xae1   : > { %v1021_v29 = vpop.permute.xlu0 %1020 }
 0xae2   : > { %1336 = vrot.lane.b32.xlu1 %v1335_v27, %s2263_s22  ;;  %v1043_v56 = vsel %vm760_vm2, %v2547_v31, %v1021_v29  ;;  %v1194_v31 = vsel %vm760_vm2, %v2559_v49, %v1172_v24  ;;  %v1325_v24 = vrot.slane %v2598_v22, 2 }
 0xae3   : > { %v1044_v63 = vsel %vm888_vm4, %v1043_v56, %v1023_v10  ;;  %v1195_v9 = vsel %vm888_vm4, %v1194_v31, %v1174_v6 }
 0xae4   : > { %1328 = vrot.lane.b32.xlu0 %v1327_v32, %s2261_s24 }
 0xae5   : > { %v1035_v35 = vpop.permute.xlu0 %1034 }
 0xae6   : > { %1342 = vrot.lane.b32.xlu1 %v1341_v34, %s2261_s24  ;;  %v1046_v50 = vsel %vm760_vm2, %v1031_v20, %v1035_v35 }
 0xae7   : > { %v1047_v59 = vsel %vm888_vm4, %v1046_v50, %v1037_v51 }
 0xae8   : > { %v1048_v3 = vsel %vm890_vm5, %v1047_v59, %v1041_v58 }
 0xae9   : > { %v1182_v42 = vpop.permute.xlu0 %1181 }
 0xaea   : > { %v1197_v61 = vsel %vm760_vm2, %v1182_v42, %v1186_v33 }
 0xaeb   : > { %v1198_v30 = vsel %vm888_vm4, %v1197_v61, %v1188_v62 }
 0xaec   : > { %v1199_v12 = vsel %vm890_vm5, %v1198_v30, %v1192_v7 }
 0xaed   : > { %v871_v54 = vpop.permute.xlu0 %870 }
 0xaee   : > { %v891_v57 = vsel %vm890_vm5, %v889_v55, %v871_v54 }
 0xaef   : > { %v897_v60 = vcombine.low %v891_v57, %v894_v13 }
 0xaf1   : > { %v904_v53 = vrot.slane %v897_v60, %v903_v52  ;;  %v1027_v0 = vpop.permute.xlu0 %1026 }
 0xaf2   : > { %v1045_v2 = vsel %vm890_vm5, %v1044_v63, %v1027_v0 }
 0xaf3   : > { %v911_v4 = vrot.slane %v904_v53, %v903_v52  ;;  %v1051_v5 = vcombine.low %v1045_v2, %v1048_v3 }
 0xaf5   : > { %917 = vst.msk [vmem:[#allocation2] ss:$4 sm:$0x3] %vm2635_vm6, %v911_v4  ;;  %v1058_v8 = vrot.slane %v1051_v5, %v903_v52  ;;  %v1178_v49 = vpop.permute.xlu0 %1177 }
 0xaf6   : > { %v1196_v11 = vsel %vm890_vm5, %v1195_v9, %v1178_v49 }
 0xaf7   : > { %v1065_v14 = vrot.slane %v1058_v8, %v903_v52  ;;  %v1202_v15 = vcombine.low %v1196_v11, %v1199_v12 }
 0xaf9   : > { %1068 = vst.msk [vmem:[#allocation2 + $0x1] ss:$4 sm:$0x3] %vm2635_vm6, %v1065_v14  ;;  %v1209_v16 = vrot.slane %v1202_v15, %v903_v52 }
 0xafb   : > { %v1216_v17 = vrot.slane %v1209_v16, %v903_v52 }
 0xafd   : > { %1219 = vst.msk [vmem:[#allocation2 + $0x2] ss:$4 sm:$0x3] %vm2635_vm6, %v1216_v17 }
 0xb4e   : > { %v1319_v48 = vpop.permute.xlu0 %1318 }
 0xb50   : > { %v1323_v18 = vpop.permute.xlu1 %1322 }
 0xb51   : > { %v1345_v21 = vsel %vm760_vm2, %v1319_v48, %v1323_v18 }
 0xb52   : > { %v1333_v19 = vpop.permute.xlu0 %1332  ;;  %v1346_v27 = vsel %vm888_vm4, %v1345_v21, %v1325_v24 }
 0xb54   : > { %v1337_v20 = vpop.permute.xlu1 %1336 }
 0xb55   : > { %v1348_v23 = vsel %vm760_vm2, %v1333_v19, %v1337_v20 }
 0xb56   : > { %v1329_v25 = vpop.permute.xlu0 %1328  ;;  %v1349_v28 = vsel %vm888_vm4, %v1348_v23, %v1339_v26 }
 0xb57   : > { %v1347_v32 = vsel %vm890_vm5, %v1346_v27, %v1329_v25 }
 0xb58   : > { %v1343_v29 = vpop.permute.xlu1 %1342 }
 0xb59   : > { %v1350_v33 = vsel %vm890_vm5, %v1349_v28, %v1343_v29 }
 0xb5a   : > { %v1353_v34 = vcombine.low %v1347_v32, %v1350_v33 }
 0xb5c   : > { %v1360_v35 = vrot.slane %v1353_v34, %v903_v52 }
 0xb5e   : > { %v1367_v36 = vrot.slane %v1360_v35, %v903_v52 }
 0xb60   : > { %1370 = vst.msk [vmem:[#allocation2 + $0x3] ss:$4 sm:$0x3] %vm2635_vm6, %v1367_v36 }
 0xb61 PF: > { %v2154_v22 = vld [vmem:[%s2461_s26 + $0x4] ss:$8 sps:$4 sm:$0xff]   ;;  %v2156_v37 = vld [vmem:[%s2461_s26] ss:$8 sps:$4 sm:$0xff]   ;;  %v2157_v38 = vld [vmem:[%s2461_s26 + $0x14] ss:$8 sps:$4 sm:$0xff]   ;;  %v1420_v16 = vlaneseq }
 0xb62   : > { %1590 = vmatprep.subr.bf16.mxu0 %v2154_v22  ;;  %v2159_v39 = vld [vmem:[%s2461_s26 + $0x10] ss:$8 sps:$4 sm:$0xff]   ;;  %v2160_v40 = vld [vmem:[%s2461_s26 + $0x24] ss:$8 sps:$4 sm:$0xff]   ;;  %v2162_v41 = vld [vmem:[%s2461_s26 + $0x20] ss:$8 sps:$4 sm:$0xff]  }
 0xb63   : > { %1591 = vmatpush1.bf16.msra.mxu0 %v2156_v37  ;;  %v2163_v42 = vld [vmem:[%s2461_s26 + $0x34] ss:$8 sps:$4 sm:$0xff]   ;;  %v2165_v43 = vld [vmem:[%s2461_s26 + $0x30] ss:$8 sps:$4 sm:$0xff]   ;;  %v2166_v44 = vld [vmem:[%s2461_s26 + $0x44] ss:$8 sps:$4 sm:$0xff]  }
 0xb64   : > { %1592 = vmatprep.subr.bf16.mxu0 %v2157_v38  ;;  %v2168_v45 = vld [vmem:[%s2461_s26 + $0x40] ss:$8 sps:$4 sm:$0xff]   ;;  %v2169_v46 = vld [vmem:[%s2461_s26 + $0x54] ss:$8 sps:$4 sm:$0xff]   ;;  %v2171_v47 = vld [vmem:[%s2461_s26 + $0x50] ss:$8 sps:$4 sm:$0xff]  }
 0xb65   : > { %v2172_v50 = vld [vmem:[%s2461_s26 + $0x64] ss:$8 sps:$4 sm:$0xff]   ;;  %v1640_v55 = vld [vmem:[%s2465_s27 + $0x18] sm:$0x3]  ;;  %v1639_v57 = vld [vmem:[%s2465_s27 + $0x10] sm:$0x3] }
 0xb66   : > { %v1638_v52 = vld [vmem:[%s2465_s27 + $0x8] sm:$0xff]  ;;  %v1637_v56 = vld [vmem:[%s2465_s27] sm:$0xff]  ;;  %v2175_v60 = vld [vmem:[%s2461_s26 + $0x74] ss:$8 sps:$4 sm:$0xff]   ;;  %v1421_v17 = vshrl.u32 %v1420_v16, 7  ;;  %s2265_s30 = smov [#allocation6]  }
 0xb67   : > { %1593 = vmatpush1.bf16.msra.mxu0 %v2159_v39  ;;  %v1380_v51 = vld [vmem:[#allocation2] sm:$0xff]  ;;  %v2174_v13 = vld [vmem:[%s2461_s26 + $0x60] ss:$8 sps:$4 sm:$0xff]   ;;  %v2076_v58 = vpack.c.bf16 %v1640_v55, %v1638_v52  ;;  %v2078_v59 = vpack.c.bf16 %v1639_v57, %v1637_v56  ;;  %v2178_v62 = vld [vmem:[%s2461_s26 + $0x84] ss:$8 sps:$4 sm:$0xff]   ;;  %vm1785_vm7 = vcmask 76800  }
 0xb68   : > { %1594 = vmatprep.subr.bf16.mxu0 %v2160_v40  ;;  %v1382_v54 = vcombine.high %v1380_v51, %v1380_v51  ;;  %v2177_v61 = vld [vmem:[%s2461_s26 + $0x70] ss:$8 sps:$4 sm:$0xff]   ;;  %v2180_v53 = vld [vmem:[%s2461_s26 + $0x80] ss:$8 sps:$4 sm:$0xff]   ;;  %v2181_v63 = vld [vmem:[%s2461_s26 + $0x94] ss:$8 sps:$4 sm:$0xff]   ;;  %v1384_v11 = vpack.c.bf16 %v1380_v51, %v1380_v51 }
 0xb69   : > { %2077 = vmatprep.subr.bf16.mxu1 %v2076_v58  ;;  %v2183_v0 = vld [vmem:[%s2461_s26 + $0x90] ss:$8 sps:$4 sm:$0xff]   ;;  %v2184_v31 = vld [vmem:[%s2461_s26 + $0xa4] ss:$8 sps:$4 sm:$0xff]   ;;  %v2186_v1 = vld [vmem:[%s2461_s26 + $0xa0] ss:$8 sps:$4 sm:$0xff]  }
 0xb6a   : > { %v1385_v10 = vpack.c.bf16 %v1382_v54, %v1382_v54  ;;  %2079 = vmatpush1.bf16.xpose.msra.mxu1 %v2078_v59  ;;  %v2187_v2 = vld [vmem:[%s2461_s26 + $0xb4] ss:$8 sps:$4 sm:$0xff]   ;;  %v2189_v3 = vld [vmem:[%s2461_s26 + $0xb0] ss:$8 sps:$4 sm:$0xff]   ;;  %v2190_v30 = vld [vmem:[%s2461_s26 + $0xc4] ss:$8 sps:$4 sm:$0xff]  }
 0xb6b   : > { %1595 = vmatpush1.bf16.msra.mxu0 %v2162_v41  ;;  %v2192_v4 = vld [vmem:[%s2461_s26 + $0xc0] ss:$8 sps:$4 sm:$0xff]   ;;  %v2193_v5 = vld [vmem:[%s2461_s26 + $0xd4] ss:$8 sps:$4 sm:$0xff]   ;;  %v2195_v6 = vld [vmem:[%s2461_s26 + $0xd0] ss:$8 sps:$4 sm:$0xff]  }
 0xb6c   : > { %1596 = vmatprep.subr.bf16.mxu0 %v2163_v42  ;;  %1622 = vmatprep.mubr.bf16.mxu0 %v1385_v10  ;;  %v2196_v7 = vld [vmem:[%s2461_s26 + $0xe4] ss:$8 sps:$4 sm:$0xff]   ;;  %v2198_v8 = vld [vmem:[%s2461_s26 + $0xe0] ss:$8 sps:$4 sm:$0xff]   ;;  %v2199_v49 = vld [vmem:[%s2461_s26 + $0xf4] ss:$8 sps:$4 sm:$0xff]  }
 0xb6d   : > { %v2201_v9 = vld [vmem:[%s2461_s26 + $0xf0] ss:$8 sps:$4 sm:$0xff]   ;;  %v1634_v12 = vld [vmem:[%s2463_s13 + $0x8] sm:$0xff]  ;;  %v1426_v48 = vsub.s32 1, %v1421_v17  ;;  %v1422_v19 = vsub.s32 0, %v1421_v17  ;;  %v1633_v23 = vld [vmem:[%s2463_s13] sm:$0xff] }
 0xb6e   : > { %v1636_v14 = vld [vmem:[%s2463_s13 + $0x18] sm:$0x3]  ;;  %v1635_v24 = vld [vmem:[%s2463_s13 + $0x10] sm:$0x3]  ;;  %v1631_v37 = vld [vmem:[#allocation6] sm:$0xf] }
 0xb6f   : > { %1597 = vmatpush1.bf16.msra.mxu0 %v2165_v43  ;;  %v2080_v15 = vpack.c.bf16 %v1636_v14, %v1634_v12  ;;  %v1418_v18 = vld [vmem:[%s637_s23] sm:$0x3]  ;;  %v2082_v32 = vpack.c.bf16 %v1635_v24, %v1633_v23  ;;  %s1794_s23 = sshll.u32 %s2265_s30, 4  ;;  %p2088_p10 = scmp.eq.s32.totalorder %s2337_s16, 3  ;;  %s1795_s23 = int_to_ptr.vmem [resolvable:$true] %s1794_s23 }
 0xb70   : > { %1598 = vmatprep.subr.bf16.mxu0 %v2166_v44  ;;  %v1427_v20 = vrot.slane %v1418_v18, %v1426_v48  ;;  %v1423_v21 = vrot.slane %v1418_v18, %v1422_v19  ;;  %v1632_v25 = vld [vmem:[%s2459_s25] sm:$0xff]  ;;  %s2204_s25 = scalar_lea.vmem %s1795_s23, 64  ;;  %p2211_p0 = scmp.lt.s32.totalorder %s1795_s23, %s1795_s23 }
 0xb71   : > { %2081 = vmatprep.subr.bf16.mxu1 %v2080_v15  ;;  %v1712_v33 = vcombine.high %v1632_v25, %v1632_v25  ;;  %p2205_p11 = scmp.ne.s32.totalorder %s1795_s23, %s2204_s25  ;;  %p2212_p1 = scmp.lt.s32.totalorder %s2204_s25, %s2204_s25 }
 0xb73   : > { %1599 = vmatpush1.bf16.msra.mxu0 %v2168_v45  ;;  %p2206_p12 = pnand %p2205_p11, %p2088_p10  ;;  %p2213_p2 = por %p2212_p1, %p2211_p0 }
 0xb74   : > { %1600 = vmatprep.subr.bf16.mxu0 %v2169_v46 }
 0xb75   : > { %p2207_p13 = pneg %p2206_p12 }
 0xb77   : > { %1601 = vmatpush1.bf16.msra.mxu0 %v2171_v47  ;;  %p2214_p3 = pnand %p2213_p2, %p2207_p13 }
 0xb78   : > { %1602 = vmatprep.subr.bf16.mxu0 %v2172_v50 }
 0xb7b   : > { %1603 = vmatpush1.bf16.msra.mxu0 %v2174_v13 }
 0xb7c   : > { %1604 = vmatprep.subr.bf16.mxu0 %v2175_v60 }
 0xb7f   : > { %1605 = vmatpush1.bf16.msra.mxu0 %v2177_v61 }
 0xb80   : > { %1606 = vmatprep.subr.bf16.mxu0 %v2178_v62 }
 0xb83   : > { %1607 = vmatpush1.bf16.msra.mxu0 %v2180_v53 }
 0xb84   : > { %1608 = vmatprep.subr.bf16.mxu0 %v2181_v63 }
 0xb87   : > { %1609 = vmatpush1.bf16.msra.mxu0 %v2183_v0 }
 0xb88   : > { %1610 = vmatprep.subr.bf16.mxu0 %v2184_v31 }
 0xb8b   : > { %1611 = vmatpush1.bf16.msra.mxu0 %v2186_v1 }
 0xb8c   : > { %1612 = vmatprep.subr.bf16.mxu0 %v2187_v2 }
 0xb8f   : > { %1613 = vmatpush1.bf16.msra.mxu0 %v2189_v3 }
 0xb90   : > { %1614 = vmatprep.subr.bf16.mxu0 %v2190_v30 }
 0xb93   : > { %1615 = vmatpush1.bf16.msra.mxu0 %v2192_v4 }
 0xb94   : > { %1616 = vmatprep.subr.bf16.mxu0 %v2193_v5 }
 0xb97   : > { %1617 = vmatpush1.bf16.msra.mxu0 %v2195_v6 }
 0xb98   : > { %1618 = vmatprep.subr.bf16.mxu0 %v2196_v7 }
 0xb9b   : > { %1619 = vmatpush1.bf16.msra.mxu0 %v2198_v8 }
 0xb9c   : > { %1620 = vmatprep.subr.bf16.mxu0 %v2199_v49 }
 0xb9f   : > { %1621 = vmatpush1.bf16.msra.mxu0 %v2201_v9 }
 0xba2   : > { %1623 = vmatmul.mubr.bf16.vlgmr.msra.gmra.mrb[0].mxu0 %v1384_v11 }
 0xc75   : > { %v1624_v26 = vpop.f32.mrb[0].mxu0 }
 0xc76   : > { %v1626_v27 = vpop.f32.mrb[1].mxu0  ;;  %v1625_v34 = vadd.f32 %v1624_v26, %v1423_v21 }
 0xc77   : > { %v1628_v28 = vpop.f32.mrb[2].mxu0  ;;  %v1627_v29 = vadd.f32 %v1626_v27, %v1427_v20 }
 0xc78   : > { %v1629_v35 = vpop.f32.mrb[3].mxu0 }
 0xc79   : > { %1705 = vmatprep.mubr.f32.mxu1 %v1627_v29 }
 0xc7a   : > { %1706 = vmatmul.mubr.f32.vlgmr.msra.gmra.mrb[0].mxu1 %v1625_v34 }
 0xc7b   : > { %2083 = vmatpush1.bf16.xpose.msra.mxu1 %v2082_v32  ;;  %1778 = vmatprep.mubr.f32.mxu1 %v1712_v33 }
 0xc82   : > { %1779 = vmatmul.mubr.f32.vlgmr.msra.gmra.mrb[2].mxu1 %v1632_v25 }
 0xd4d   : > { %v1707_v36 = vpop.f32.mrb[0].mxu1 }
 0xd4e   : > { %v1709_v22 = vpop.f32.mrb[1].mxu1 }
 0xd55   : > { %v1780_v38 = vpop.f32.mrb[2].mxu1 }
 0xd56   : > { %v1781_v39 = vadd.f32 %v1780_v38, %v1707_v36  ;;  %v1782_v40 = vpop.f32.mrb[3].mxu1 }
 0xd58   : > { %v1784_v41 = vadd.f32 %v1781_v39, %v1631_v37 }
 0xd5a   : > { %1786 = vst.msk [vmem:[#allocation6] sm:$0xf] %vm1785_vm7, %v1784_v41 }
 0xd5b   : > { %2217 = shalt.err (!%p2214_p3)
}
 0xd5c   : > { %s2218_s24 = scalar_lea.hbm %s2751_s10, 64 }
 0xd5d   : > { %p2219_p4 = scmp.ne.s32.totalorder %s2751_s10, %s2218_s24  ;;  %p2224_p7 = scmp.lt.u32.totalorder %s2218_s24, %s2751_s10 }
 0xd5f   : > { %p2220_p5 = pnand %p2219_p4, %p2088_p10 }
 0xd61   : > { %p2221_p6 = pneg %p2220_p5 }
 0xd63   : > { %p2226_p8 = pnand %p2224_p7, %p2221_p6 }
 0xd65   : > { %2229 = shalt.err (!%p2226_p8)
}
 0xd66   : > { %2085 = dma.vmem_to_hbm [thread:$0]  (%p2088_p10), %s1795_s23, 64, %s2751_s10, [#allocation7]  }
 0xd67   : > { %2243 = dma.done.wait (%p2088_p10), [#allocation7], 64  }
 0xd68   : > { %2245 = vsyncadd (%p2088_p10), [#allocation7], 4294967232 }
 0xd69 PF: > { %p18_p9 = scmp.ge.s32.totalorder %s2340_s17, 6   ;;  %s2755_s13 = smov %s2252_s14 }
 0xd6a   : > { %s2756_s14 = smov %s2349_s20  ;;  %s2757_s15 = smov %s2340_s17 }
 0xd6b   :  { %20 = sbr.rel (!%p18_p9) target bundleno = 2 (0x2), region = 205 }
 0xd72   :  { %1807 = vsyncpa [#allocation7], 1 }
 0xd73   :  { %1809 = vsyncpa [#allocation7 + $0x1], 1 }

</bundles_post_ra>
